<compile_context>
chip_gen: v6e
topology: v6e:2x2x1
jax: 0.10.0
libtpu: 0.0.40
codegen_flags: <defaults>
</compile_context>

<pallas_src>
import random

import jax
import jax.numpy as jnp
from jax.experimental import pallas as pl
from jax.experimental.pallas import tpu as pltpu


_LANES = 512         # lane-dense last dim (multiple of 128, unmasked vst)
_MAX_ROW_TILE = 512  # sublane tile cap; 512x512 f32 block = 1 MiB


# ---------------------------------------------------------------------------
# Pallas kernel factory: elementwise hot path, specialized on the training
# flag at trace time (flag is a Python constant, not a runtime scalar).
# ---------------------------------------------------------------------------
def _make_cra_kernel(suppress: bool):
    def kernel(x_ref, o_ref):
        x = x_ref[...]
        xf = x.astype(jnp.float32)           # f32 math (v5e has no bf16 VPU/EUP)
        fm = jax.nn.sigmoid(xf)               # EUP transcendental
        if suppress:                           # flag == 1 -> suppress_map * x
            m = jnp.where(fm >= 0.7, jnp.float32(0.01), fm)
        else:                                  # flag == 0 -> enhence_map * x
            m = jnp.where(fm >= 0.7, fm, jnp.float32(0.01))
        o_ref[...] = (m * xf).astype(o_ref.dtype)

    return kernel


def _pick_row_tile(rows: int) -> int:
    """Largest multiple-of-8 tile <= _MAX_ROW_TILE that we can pad rows to."""
    if rows >= _MAX_ROW_TILE:
        return _MAX_ROW_TILE
    return max(8, -(-rows // 8) * 8)


def cross_region_attention_forward(x, params=None, *, training=False, flag=0):
    """Forward pass of CrossRegionAttention.

    NOTE: exactly like the PyTorch module, forward() does NOT consume any of
    the learned parameters (q/k/v, proj_*, outa, gga, region_attn, ...); they
    exist in __init__ but are unused.  `params` is kept for interface fidelity.
    """
    del params  # unused by forward (matches PyTorch module semantics)

    if not training:
        return x  # eval path is an identity: skip the kernel entirely

    B, C, H, W = x.shape
    n = x.size

    rows = -(-n // _LANES)
    row_tile = _pick_row_tile(rows)
    rows_padded = -(-rows // row_tile) * row_tile
    pad = rows_padded * _LANES - n

    # Zero-copy fast path when no tail padding is required; otherwise pad the
    # ragged tail once (only the small-shape / odd-size case pays for it).
    flat = x.reshape(-1)
    if pad:
        flat = jnp.pad(flat, (0, pad))
    x2d = flat.reshape(rows_padded, _LANES)

    grid = (rows_padded // row_tile,)
    kernel = _make_cra_kernel(suppress=(flag == 1))

    out2d = pl.pallas_call(
        kernel,
        out_shape=jax.ShapeDtypeStruct(x2d.shape, x.dtype),
        grid_spec=pltpu.PrefetchScalarGridSpec(
            num_scalar_prefetch=0,
            grid=grid,
            in_specs=[pl.BlockSpec((row_tile, _LANES), lambda i: (i, 0))],
            out_specs=pl.BlockSpec((row_tile, _LANES), lambda i: (i, 0)),
        ),
        compiler_params=pltpu.CompilerParams(
            dimension_semantics=("parallel",),
        ),
        cost_estimate=pl.CostEstimate(
            flops=6 * n,
            transcendentals=n,
            bytes_accessed=2 * n * x.dtype.itemsize,
        ),
    )(x2d)

    if pad:
        return out2d.reshape(-1)[:n].reshape(B, C, H, W)
    return out2d.reshape(B, C, H, W)


# ---------------------------------------------------------------------------
# Deterministic parameter initialization (shapes implied by __init__).
# Unused by forward(), constructed only for module-interface fidelity.
# ---------------------------------------------------------------------------
def init_params(key, dim, out_dim):
    ks = jax.random.split(key, 8)
    return {
        "q_w": jax.random.normal(ks[0], (dim, dim), jnp.float32) * 0.02,
        "k_w": jax.random.normal(ks[1], (dim, dim), jnp.float32) * 0.02,
        "v_w": jax.random.normal(ks[2], (dim, dim), jnp.float32) * 0.02,
        "proj_inside_w": jax.random.normal(ks[3], (dim, dim), jnp.float32) * 0.02,
        "proj_region_w": jax.random.normal(ks[4], (dim, dim), jnp.float32) * 0.02,
        "region_attn_wk_w": jax.random.normal(ks[5], (1, dim, 1, 1), jnp.float32) * 0.02,
        "outa_conv_w": jax.random.normal(ks[6], (out_dim, dim, 1, 1), jnp.float32) * 0.02,
        "gga_conv_w": jax.random.normal(ks[7], (out_dim, dim, 1, 1), jnp.float32) * 0.02,
    }


# ---------------------------------------------------------------------------
# Pure-JAX reference for verification.
# ---------------------------------------------------------------------------
def reference_forward(x, *, training=False, flag=0):
    fm = jax.nn.sigmoid(x)
    small = jnp.zeros_like(fm) + 0.01
    suppress = jnp.where(fm >= 0.7, small, fm)
    enhance = jnp.where(fm >= 0.7, fm, small)
    if not training:
        return x
    return suppress * x if flag == 1 else enhance * x


if __name__ == "__main__":
    key = jax.random.PRNGKey(0)
    k_x, k_p = jax.random.split(key)

    # Small shapes consistent with the module: dim=4, out_dim=4, H=W=16.
    B, C, H, W = 2, 4, 16, 16
    x = jax.random.normal(k_x, (B, C, H, W), jnp.float32)
    params = init_params(k_p, dim=C, out_dim=C)

    # Eval mode (self.training == False): output == x, kernel skipped.
    out_eval = jax.block_until_ready(
        cross_region_attention_forward(x, params, training=False))
    assert jnp.allclose(out_eval, reference_forward(x, training=False),
                        atol=1e-6), "eval-mode mismatch"

    # Training mode: deterministic flag via seeded random.choice([0, 0, 1, 1]).
    random.seed(0)
    flag = random.choice([0, 0, 1, 1])
    out_train = jax.block_until_ready(
        cross_region_attention_forward(x, params, training=True, flag=flag))
    assert jnp.allclose(out_train,
                        reference_forward(x, training=True, flag=flag),
                        atol=1e-6), "training-mode mismatch"

    # Exercise both specialized kernels (flag=0 enhance, flag=1 suppress).
    for f in (0, 1):
        out_f = jax.block_until_ready(
            cross_region_attention_forward(x, params, training=True, flag=f))
        ref_f = reference_forward(x, training=True, flag=f)
        assert jnp.allclose(out_f, ref_f, atol=1e-6), f"flag={f} mismatch"

    # Also exercise a pad-free, multi-block shape (zero-copy fast path).
    x_big = jax.random.normal(k_x, (2, 8, 64, 64), jnp.float32)  # 65536 elems
    out_big = jax.block_until_ready(
        cross_region_attention_forward(x_big, None, training=True, flag=1))
    ref_big = reference_forward(x_big, training=True, flag=1)
    assert jnp.allclose(out_big, ref_big, atol=1e-6), "large-shape mismatch"

    print("KERNEL_OK")
</pallas_src>

<mosaic_0001>
module attributes {stable_mosaic.version = 11 : i64} {
  func.func @kernel(%arg0: i32, %arg1: memref<8x512xf32, #tpu.memory_space<vmem>>, %arg2: memref<8x512xf32, #tpu.memory_space<vmem>>) attributes {dimension_semantics = [#tpu.dimension_semantics<parallel>], iteration_bounds = array<i64: 1>, scalar_prefetch = 0 : i64, scratch_operands = 0 : i64, tpu.core_type = #tpu.core_type<tc>, window_params = [{transform_indices = @transform_0, window_bounds = array<i64: 8, 512>}, {transform_indices = @transform_1, window_bounds = array<i64: 8, 512>}]} {
    %c0 = arith.constant 0 : index
    %c0_0 = arith.constant 0 : index
    %0 = vector.load %arg1[%c0, %c0_0] : memref<8x512xf32, #tpu.memory_space<vmem>>, vector<8x512xf32>
    %1 = arith.negf %0 : vector<8x512xf32>
    %2 = math.exp %1 : vector<8x512xf32>
    %cst = arith.constant 1.000000e+00 : f32
    %3 = vector.broadcast %cst : f32 to vector<8x512xf32>
    %4 = arith.addf %3, %2 : vector<8x512xf32>
    %5 = arith.divf %3, %4 : vector<8x512xf32>
    %cst_1 = arith.constant 0.699999988 : f32
    %6 = vector.broadcast %cst_1 : f32 to vector<8x512xf32>
    %7 = arith.cmpf oge, %5, %6 : vector<8x512xf32>
    %cst_2 = arith.constant 0.00999999977 : f32
    %8 = vector.broadcast %cst_2 : f32 to vector<8x512xf32>
    %9 = arith.select %7, %8, %5 : vector<8x512xi1>, vector<8x512xf32>
    %10 = arith.mulf %9, %0 : vector<8x512xf32>
    %c0_3 = arith.constant 0 : index
    %c0_4 = arith.constant 0 : index
    %11 = vector.load %arg2[%c0_3, %c0_4] : memref<8x512xf32, #tpu.memory_space<vmem>>, vector<8x512xf32>
    tpu.vector_store %arg2[%c0_3, %c0_4], %10 {strides = array<i32>} : memref<8x512xf32, #tpu.memory_space<vmem>>, vector<8x512xf32>,
    return
  }
  func.func @transform_0(%arg0: i32) -> (i32, i32) {
    %c0_i32 = arith.constant 0 : i32
    %c0_i32_0 = arith.constant 0 : i32
    return %arg0, %c0_i32 : i32, i32
  }
  func.func @transform_1(%arg0: i32) -> (i32, i32) {
    %c0_i32 = arith.constant 0 : i32
    %c0_i32_0 = arith.constant 0 : i32
    return %arg0, %c0_i32 : i32, i32
  }
}

</mosaic_0001>

<bundles_post_ra>
// kernel: tpu_custom_call.1
= control target key start
LH: loop header
LB: loop body
LE: loop exit
PB: predicated region body
PF: predicated region fallthrough
CT: control target
= control target key end

     0   :  { %6 = vsyncpa [#allocation3], 0  ;;  %s164_s0 = inlined_call_operand.hbm [shape: f32[8,512], index: 0, kind: input, shape index: {}]   ;;  %s165_s1 = inlined_call_operand.hbm [shape: f32[8,512], index: 1, kind: output, shape index: {}]  }
   0x1   :  { %7 = vsyncpa [#allocation4], 0  ;;  %s146_s6 = smov [#allocation2]  }
   0x2   :  { %s14_s7 = sshll.u32 %s146_s6, 4  ;;  %s15_s7 = int_to_ptr.vmem [resolvable:$true] %s14_s7 }
   0x3   :  { %s110_s8 = scalar_lea.vmem %s15_s7, 512  ;;  %p115_p1 = scmp.lt.s32.totalorder %s15_s7, %s15_s7 }
   0x4   :  { %p111_p0 = scmp.ne.s32.totalorder %s15_s7, %s110_s8  ;;  %p116_p2 = scmp.lt.s32.totalorder %s110_s8, %s110_s8 }
   0x6   :  { %p117_p3 = por %p116_p2, %p115_p1 }
   0x8   :  { %p118_p4 = pnand %p117_p3, %p111_p0 }
   0xa   :  { %121 = shalt.err (!%p118_p4)
}
   0xb   :  { %17 = dma.hbm_to_vmem [thread:$0]  %s164_s0, 512, %s15_s7, [#allocation3]  }
   0xc   :  { %142 = dma.done.wait [#allocation3], 512  }
   0xd   :  { %143 = vsyncadd [#allocation3], 4294966784  ;;  %v21_v0 = vld [vmem:[#allocation2] sm:$0xff]  ;;  %v22_v1 = vld [vmem:[#allocation2 + $0x8] sm:$0xff]  ;;  %s147_s0 = smov [#allocation5]  }
   0xe   :  { %v23_v2 = vld [vmem:[#allocation2 + $0x10] sm:$0xff]  ;;  %v80_v3 = vmul.f32 -1.442695, %v21_v0  ;;  %v81_v4 = vmul.f32 -1.442695, %v22_v1  ;;  %v24_v6 = vld [vmem:[#allocation2 + $0x18] sm:$0xff] }
   0xf   :  { %v82_v5 = vmul.f32 -1.442695, %v23_v2  ;;  %v83_v7 = vmul.f32 -1.442695, %v24_v6  ;;  %s71_s11 = sshll.u32 %s147_s0, 4  ;;  %s72_s11 = int_to_ptr.vmem [resolvable:$true] %s71_s11 }
  0x10   :  { %86 = vpow2.f32 %v80_v3  ;;  %s122_s12 = scalar_lea.vmem %s72_s11, 512  ;;  %p127_p6 = scmp.lt.s32.totalorder %s72_s11, %s72_s11 }
  0x11   :  { %88 = vpow2.f32 %v81_v4  ;;  %p123_p5 = scmp.ne.s32.totalorder %s72_s11, %s122_s12  ;;  %p128_p7 = scmp.lt.s32.totalorder %s122_s12, %s122_s12 }
  0x12   :  { %90 = vpow2.f32 %v82_v5 }
  0x13   :  { %92 = vpow2.f32 %v83_v7  ;;  %p129_p8 = por %p128_p7, %p127_p6 }
  0x15   :  { %p130_p9 = pnand %p129_p8, %p123_p5 }
  0x1d   :  { %v87_v8 = vpop.eup %86 }
  0x1e   :  { %v89_v9 = vpop.eup %88  ;;  %v37_v10 = vadd.f32 1.0, %v87_v8 }
  0x1f   :  { %v91_v11 = vpop.eup %90  ;;  %v38_v12 = vadd.f32 1.0, %v89_v9 }
  0x20   :  { %v93_v13 = vpop.eup %92  ;;  %94 = vrcp.f32 %v37_v10  ;;  %v39_v14 = vadd.f32 1.0, %v91_v11 }
  0x21   :  { %96 = vrcp.f32 %v38_v12  ;;  %v40_v15 = vadd.f32 1.0, %v93_v13 }
  0x22   :  { %98 = vrcp.f32 %v39_v14 }
  0x23   :  { %100 = vrcp.f32 %v40_v15 }
  0x2d   :  { %v95_v16 = vpop.eup %94 }
  0x2e   :  { %v97_v17 = vpop.eup %96  ;;  %vm49_vm0 = vcmp.ge.f32.partialorder %v95_v16, 0.7 }
  0x2f   :  { %v99_v18 = vpop.eup %98  ;;  %v53_v19 = vsel %vm49_vm0, 0.01, %v95_v16  ;;  %vm50_vm1 = vcmp.ge.f32.partialorder %v97_v17, 0.7 }
  0x30   :  { %v101_v20 = vpop.eup %100  ;;  %v57_v21 = vmul.f32 %v53_v19, %v21_v0  ;;  %v54_v22 = vsel %vm50_vm1, 0.01, %v97_v17  ;;  %vm51_vm2 = vcmp.ge.f32.partialorder %v99_v18, 0.7 }
  0x31   :  { %v58_v23 = vmul.f32 %v54_v22, %v22_v1  ;;  %v55_v24 = vsel %vm51_vm2, 0.01, %v99_v18  ;;  %vm52_vm3 = vcmp.ge.f32.partialorder %v101_v20, 0.7 }
  0x32   :  { %61 = vst [vmem:[#allocation5] sm:$0xff] %v57_v21  ;;  %v59_v25 = vmul.f32 %v55_v24, %v23_v2  ;;  %v56_v26 = vsel %vm52_vm3, 0.01, %v101_v20 }
  0x33   :  { %62 = vst [vmem:[#allocation5 + $0x8] sm:$0xff] %v58_v23  ;;  %v60_v27 = vmul.f32 %v56_v26, %v24_v6 }
  0x34   :  { %63 = vst [vmem:[#allocation5 + $0x10] sm:$0xff] %v59_v25 }
  0x35   :  { %64 = vst [vmem:[#allocation5 + $0x18] sm:$0xff] %v60_v27 }
  0x36   :  { %133 = shalt.err (!%p130_p9)
}
  0x37   :  { %74 = dma.vmem_to_hbm [thread:$0]  %s72_s11, 512, %s165_s1, [#allocation4]  }
  0x38   :  { %144 = dma.done.wait [#allocation4], 512  }
  0x39   :  { %145 = vsyncadd [#allocation4], 4294966784 }
  0x3a   :  { %78 = vsyncpa [#allocation3], 1 }
  0x3b   :  { %79 = vsyncpa [#allocation4], 1 }

</bundles_post_ra>
